<compile_context>
chip_gen: v7x
topology: tpu7x:2x2x1
jax: 0.10.0
libtpu: 0.0.40
codegen_flags: <defaults>
</compile_context>

<pallas_src>
import math

import jax
import jax.numpy as jnp
from jax.experimental import pallas as pl
from jax.experimental.pallas import tpu as pltpu

LANES = 128                           # vreg lane width
SUBLANES = 8                          # f32 sublane count
MAX_TILE_ROWS = 2048                  # (2048,128) f32 tile = 1 MiB per buffer
MIN_PALLAS_ELEMS = SUBLANES * LANES   # below this, plain XLA beats launch overhead


def _cdiv(a, b):
    return -(-a // b)


def _make_l1_partial_kernel(rows, tile_rows):
    """Kernel accumulating per-lane sum(|a-b|) into a resident (8,128) block.

    `rows` / `tile_rows` are Python ints baked in at trace time, so the
    partial-last-block handling is a statically gated cold path; every full
    block takes the unmasked fast path.
    """
    num_blocks = _cdiv(rows, tile_rows)
    last_rows = rows - (num_blocks - 1) * tile_rows   # valid rows in last block
    last_is_partial = last_rows != tile_rows

    def kernel(a_ref, b_ref, o_ref):
        i = pl.program_id(0)

        @pl.when(i == 0)
        def _init():
            o_ref[...] = jnp.zeros_like(o_ref)

        # Elementwise |a - b| in f32 (inputs may be bf16 in HBM).
        d = jnp.abs(a_ref[...].astype(jnp.float32) - b_ref[...].astype(jnp.float32))

        def _accumulate(x):
            # Tile-aligned reshape + sum over the leading axis lowers to pure
            # VPU adds (no XLU); the accumulator stays a single (8,128) block.
            o_ref[...] += x.reshape(tile_rows // SUBLANES, SUBLANES, LANES).sum(axis=0)

        if last_is_partial:
            # Fast path: all full blocks — no iota / compare / select.
            @pl.when(i < num_blocks - 1)
            def _full():
                _accumulate(d)

            # Cold path: only the partial last block masks its out-of-range
            # rows (their VMEM contents are undefined after the partial DMA).
            @pl.when(i == num_blocks - 1)
            def _tail():
                row = jax.lax.broadcasted_iota(jnp.int32, (tile_rows, LANES), 0)
                _accumulate(jnp.where(row < last_rows, d, 0.0))
        else:
            _accumulate(d)

    return kernel


def _l1_sum_pallas_2d(a2, b2, rows, tile_rows):
    """sum(|a2 - b2|) over a (rows, 128) pair via a streaming Pallas reduction."""
    num_blocks = _cdiv(rows, tile_rows)
    itemsize = jnp.dtype(a2.dtype).itemsize
    partials = pl.pallas_call(
        _make_l1_partial_kernel(rows, tile_rows),
        out_shape=jax.ShapeDtypeStruct((SUBLANES, LANES), jnp.float32),
        grid_spec=pltpu.PrefetchScalarGridSpec(
            num_scalar_prefetch=0,
            grid=(num_blocks,),
            in_specs=[
                pl.BlockSpec((tile_rows, LANES), lambda i: (i, 0)),
                pl.BlockSpec((tile_rows, LANES), lambda i: (i, 0)),
            ],
            out_specs=pl.BlockSpec((SUBLANES, LANES), lambda i: (0, 0)),
        ),
        compiler_params=pltpu.CompilerParams(
            dimension_semantics=("arbitrary",),
        ),
        cost_estimate=pl.CostEstimate(
            flops=3 * rows * LANES,
            transcendentals=0,
            bytes_accessed=2 * rows * LANES * itemsize + SUBLANES * LANES * 4,
        ),
    )(a2, b2)
    # Single tiny cross-lane reduction of the (8,128) partials on the host side.
    return jnp.sum(partials)


def l1_mean_pallas(a, b):
    """mean(|a - b|) with the elementwise + reduction hot path in Pallas."""
    assert a.shape == b.shape, (a.shape, b.shape)
    n = math.prod(a.shape)
    if n == 0:
        return jnp.float32(0.0)

    # Tiny inputs: a single fused XLA kernel beats pallas_call launch overhead.
    if n < MIN_PALLAS_ELEMS:
        return jnp.mean(jnp.abs(a.astype(jnp.float32) - b.astype(jnp.float32)))

    a_flat = a.reshape(-1)
    b_flat = b.reshape(-1)

    # 128-aligned prefix goes through Pallas; the (<128-element) ragged tail is
    # reduced with plain jnp.  No whole-array pad/copy on the common aligned path.
    n_aligned = (n // LANES) * LANES
    tail_sum = jnp.float32(0.0)
    if n_aligned != n:
        tail_sum = jnp.sum(
            jnp.abs(a_flat[n_aligned:].astype(jnp.float32)
                    - b_flat[n_aligned:].astype(jnp.float32)))
        a_flat = a_flat[:n_aligned]
        b_flat = b_flat[:n_aligned]

    rows = n_aligned // LANES            # >= 8 because n >= MIN_PALLAS_ELEMS
    a2 = a_flat.reshape(rows, LANES)     # free bitcast when n % 128 == 0
    b2 = b_flat.reshape(rows, LANES)

    # Largest sublane-aligned tile that does not exceed the array extent.
    tile_rows = min(MAX_TILE_ROWS, (rows // SUBLANES) * SUBLANES)

    prefix_sum = _l1_sum_pallas_2d(a2, b2, rows, tile_rows)
    return (prefix_sum + tail_sum) / jnp.float32(n)


def empty_loss(raw, pred, ref):
    """EmptyLoss: placeholder loss that contributes nothing."""
    return jnp.float32(0.0)


def cc_loss_v4_0(raw, cc, ref):
    """CCLossV4_0 (assumed mean-L1 between cc prediction and reference)."""
    # TODO(synk): CCLossV4_0 source not provided; mean-L1 assumed.
    return l1_mean_pallas(cc, ref)


def cc_loss_forward(raw, ref, hr, cc, enc, loss_weight=1.0):
    """CCLoss.forward — loss_weight is unused in the original forward."""
    ccloss = cc_loss_v4_0(raw, cc, ref)
    hrloss = empty_loss(raw, hr, ref)
    encloss = empty_loss(raw, enc, ref)
    return ccloss + hrloss + encloss


if __name__ == "__main__":
    key = jax.random.PRNGKey(0)
    k_raw, k_ref, k_hr, k_cc, k_enc = jax.random.split(key, 5)

    # Small NCHW image-like inputs (batch=2, channels=3, spatial=16x16).
    # 1536 elements -> rows=12, tile_rows=8: exercises the multi-block grid and
    # the masked partial last block.
    shape = (2, 3, 16, 16)
    raw = jax.random.uniform(k_raw, shape, dtype=jnp.float32)
    ref = jax.random.uniform(k_ref, shape, dtype=jnp.float32)
    hr = jax.random.uniform(k_hr, shape, dtype=jnp.float32)
    cc = jax.random.uniform(k_cc, shape, dtype=jnp.float32)
    enc = jax.random.uniform(k_enc, shape, dtype=jnp.float32)

    loss = jax.block_until_ready(cc_loss_forward(raw, ref, hr, cc, enc))
    expected = jnp.mean(jnp.abs(cc - ref))
    assert jnp.allclose(loss, expected, rtol=1e-5, atol=1e-6), (loss, expected)

    # Ragged-size check: exercises the plain-jnp tail path plus the in-kernel
    # partial-last-block mask (1155 elems -> 3-element tail, 9 rows, 2 blocks).
    k_a, k_b = jax.random.split(jax.random.PRNGKey(1), 2)
    a_r = jax.random.uniform(k_a, (3, 5, 77), dtype=jnp.float32)
    b_r = jax.random.uniform(k_b, (3, 5, 77), dtype=jnp.float32)
    got = jax.block_until_ready(l1_mean_pallas(a_r, b_r))
    want = jnp.mean(jnp.abs(a_r - b_r))
    assert jnp.allclose(got, want, rtol=1e-5, atol=1e-6), (got, want)

    print("KERNEL_OK")
</pallas_src>

<mosaic_0001>
module attributes {stable_mosaic.version = 11 : i64} {
  func.func @kernel(%arg0: i32, %arg1: memref<8x128xf32, #tpu.memory_space<vmem>>, %arg2: memref<8x128xf32, #tpu.memory_space<vmem>>, %arg3: memref<8x128xf32, #tpu.memory_space<vmem>>) attributes {dimension_semantics = [#tpu.dimension_semantics<arbitrary>], iteration_bounds = array<i64: 2>, scalar_prefetch = 0 : i64, scratch_operands = 0 : i64, tpu.core_type = #tpu.core_type<tc>, window_params = [{transform_indices = @transform_0, window_bounds = array<i64: 8, 128>}, {transform_indices = @transform_1, window_bounds = array<i64: 8, 128>}, {pipeline_mode = #tpu.pipeline_mode<synchronous>, transform_indices = @transform_2, window_bounds = array<i64: 8, 128>}]} {
    %c0_i32 = arith.constant 0 : i32
    %0 = arith.cmpi eq, %arg0, %c0_i32 : i32
    %1 = arith.extui %0 : i1 to i32
    %c0_i32_0 = arith.constant 0 : i32
    %2 = arith.cmpi ne, %1, %c0_i32_0 : i32
    scf.if %2 {
      %cst = arith.constant 0.000000e+00 : f32
      %13 = vector.broadcast %cst : f32 to vector<8x128xf32>
      %c0_7 = arith.constant 0 : index
      %c0_8 = arith.constant 0 : index
      %14 = vector.load %arg3[%c0_7, %c0_8] : memref<8x128xf32, #tpu.memory_space<vmem>>, vector<8x128xf32>
      tpu.vector_store %arg3[%c0_7, %c0_8], %13 {strides = array<i32>} : memref<8x128xf32, #tpu.memory_space<vmem>>, vector<8x128xf32>,
    } else {
    }
    %c0 = arith.constant 0 : index
    %c0_1 = arith.constant 0 : index
    %3 = vector.load %arg1[%c0, %c0_1] : memref<8x128xf32, #tpu.memory_space<vmem>>, vector<8x128xf32>
    %c0_2 = arith.constant 0 : index
    %c0_3 = arith.constant 0 : index
    %4 = vector.load %arg2[%c0_2, %c0_3] : memref<8x128xf32, #tpu.memory_space<vmem>>, vector<8x128xf32>
    %5 = arith.subf %3, %4 : vector<8x128xf32>
    %6 = math.absf %5 : vector<8x128xf32>
    %c1_i32 = arith.constant 1 : i32
    %7 = arith.cmpi slt, %arg0, %c1_i32 : i32
    %8 = arith.extui %7 : i1 to i32
    %c0_i32_4 = arith.constant 0 : i32
    %9 = arith.cmpi ne, %8, %c0_i32_4 : i32
    scf.if %9 {
      %c0_7 = arith.constant 0 : index
      %c0_8 = arith.constant 0 : index
      %13 = vector.load %arg3[%c0_7, %c0_8] : memref<8x128xf32, #tpu.memory_space<vmem>>, vector<8x128xf32>
      %14 = vector.shape_cast %6 : vector<8x128xf32> to vector<1x8x128xf32>
      %cst = arith.constant dense<0.000000e+00> : vector<8x128xf32>
      %15 = vector.multi_reduction <add>, %14, %cst [0] : vector<1x8x128xf32> to vector<8x128xf32>
      %16 = arith.addf %13, %15 : vector<8x128xf32>
      %c0_9 = arith.constant 0 : index
      %c0_10 = arith.constant 0 : index
      %17 = vector.load %arg3[%c0_9, %c0_10] : memref<8x128xf32, #tpu.memory_space<vmem>>, vector<8x128xf32>
      tpu.vector_store %arg3[%c0_9, %c0_10], %16 {strides = array<i32>} : memref<8x128xf32, #tpu.memory_space<vmem>>, vector<8x128xf32>,
    } else {
    }
    %c1_i32_5 = arith.constant 1 : i32
    %10 = arith.cmpi eq, %arg0, %c1_i32_5 : i32
    %11 = arith.extui %10 : i1 to i32
    %c0_i32_6 = arith.constant 0 : i32
    %12 = arith.cmpi ne, %11, %c0_i32_6 : i32
    scf.if %12 {
      %13 = tpu.iota {dimensions = array<i32: 0>} : vector<8x128xi32>
      %c4_i32 = arith.constant 4 : i32
      %14 = vector.broadcast %c4_i32 : i32 to vector<8x128xi32>
      %15 = arith.cmpi slt, %13, %14 : vector<8x128xi32>
      %cst = arith.constant 0.000000e+00 : f32
      %16 = vector.broadcast %cst : f32 to vector<8x128xf32>
      %17 = arith.select %15, %6, %16 : vector<8x128xi1>, vector<8x128xf32>
      %c0_7 = arith.constant 0 : index
      %c0_8 = arith.constant 0 : index
      %18 = vector.load %arg3[%c0_7, %c0_8] : memref<8x128xf32, #tpu.memory_space<vmem>>, vector<8x128xf32>
      %19 = vector.shape_cast %17 : vector<8x128xf32> to vector<1x8x128xf32>
      %cst_9 = arith.constant dense<0.000000e+00> : vector<8x128xf32>
      %20 = vector.multi_reduction <add>, %19, %cst_9 [0] : vector<1x8x128xf32> to vector<8x128xf32>
      %21 = arith.addf %18, %20 : vector<8x128xf32>
      %c0_10 = arith.constant 0 : index
      %c0_11 = arith.constant 0 : index
      %22 = vector.load %arg3[%c0_10, %c0_11] : memref<8x128xf32, #tpu.memory_space<vmem>>, vector<8x128xf32>
      tpu.vector_store %arg3[%c0_10, %c0_11], %21 {strides = array<i32>} : memref<8x128xf32, #tpu.memory_space<vmem>>, vector<8x128xf32>,
    } else {
    }
    return
  }
  func.func @transform_0(%arg0: i32) -> (i32, i32) {
    %c0_i32 = arith.constant 0 : i32
    %c0_i32_0 = arith.constant 0 : i32
    return %arg0, %c0_i32 : i32, i32
  }
  func.func @transform_1(%arg0: i32) -> (i32, i32) {
    %c0_i32 = arith.constant 0 : i32
    %c0_i32_0 = arith.constant 0 : i32
    return %arg0, %c0_i32 : i32, i32
  }
  func.func @transform_2(%arg0: i32) -> (i32, i32) {
    %c0_i32 = arith.constant 0 : i32
    %c0_i32_0 = arith.constant 0 : i32
    %c0_i32_1 = arith.constant 0 : i32
    return %c0_i32, %c0_i32_0 : i32, i32
  }
}

</mosaic_0001>

<bundles_post_ra>
// kernel: tpu_custom_call.1
= control target key start
LH: loop header
LB: loop body
LE: loop exit
PB: predicated region body
PF: predicated region fallthrough
CT: control target
= control target key end

     0   :  { %7 = vsyncpa [#allocation3], 0  ;;  %s686_s0 = inlined_call_operand.hbm [shape: f32[12,128], index: 0, kind: input, shape index: {}]   ;;  %s687_s1 = inlined_call_operand.hbm [shape: f32[12,128], index: 1, kind: input, shape index: {}]   ;;  %s688_s2 = inlined_call_operand.hbm [shape: f32[8,128], index: 2, kind: output, shape index: {}]  }
   0x1   :  { %9 = vsyncpa [#allocation3 + $0x1], 0 }
   0x2   :  { %10 = vsyncpa [#allocation6], 0 }
   0x3   :  { %12 = vsyncpa [#allocation6 + $0x1], 0 }
   0x4   :  { %13 = vsyncpa [#allocation4], 0  ;;  %s511_s9 = smov 0   ;;  %s513_s10 = smov 0  }
   0x5   :  { %s515_s11 = smov 0   ;;  %s517_s12 = smov 0  }
   0x6 LB: > { %s530_s13 = sadd.s32 4294967295, %s490_s12   ;;  %s533_s14 = sadd.s32 1, %s490_s12   ;;  %s490_s12 = sphi %s517_s12, %s700_s12   ;;  %s486_s11 = sphi %s515_s11, %s699_s11   ;;  %s482_s10 = sphi %s513_s10, %s698_s10   ;;  %s478_s9 = sphi %s511_s9, %s697_s9  }
   0x7   : > { %s23_s15 = ssub.s32 %s490_s12, %s533_s14  ;;  %s26_s16 = sadd.s32 1, %s486_s11 }
   0x8   : > { %p24_p0 = scmp.eq.s32.totalorder %s23_s15, 0  ;;  %p33_p1 = scmp.ne.s32.totalorder %s486_s11, %s482_s10 }
   0x9   : > { %p34_p2 = scmp.eq.s32.totalorder %s490_s12, 0  ;;  %p39_p3 = scmp.ne.s32.totalorder %s482_s10, %s478_s9 }
   0xa   : > { %s543_s17 = scalar_select %p24_p0, %s486_s11, %s26_s16  }
   0xb   : > { %p35_p4 = por %p34_p2, %p33_p1  ;;  %p40_p5 = scmp.eq.s32.totalorder %s530_s13, 0 }
   0xc   : > { %p325_p6 = scmp.lt.s32.totalorder %s490_s12, 2  ;;  %s552_s19 = sand.u32 1, %s486_s11  }
   0xd   : > { %p547_p7 = por %p40_p5, %p39_p3  ;;  %s296_s20 = sshll.u32 %s552_s19, 3 }
   0xe   : > { %s297_s21 = sshll.u32 %s490_s12, 7  ;;  %s114_s25 = scalar_lea.vmem [#allocation2], %s296_s20 }
   0xf   : > { %s690_s18 = scalar_select %p547_p7, 1, 0 }
  0x10   : > { %s561_s24 = scalar_lea.hbm %s686_s0, %s297_s21  ;;  %s121_s26 = sshll.u32 %s114_s25, 4  ;;  %s565_s26 = int_to_ptr.vmem [resolvable:$true] %s121_s26 }
  0x11   : > { %p567_p8 = pnand %p325_p6, %p35_p4  ;;  %s111_s28 = scalar_lea.sflag [#allocation3], %s552_s19 }
  0x12   : > { %s362_s29 = scalar_lea.hbm %s561_s24, 128  ;;  %s367_s4 = scalar_lea.hbm %s686_s0, 256 }
  0x13   : > { %p363_p11 = scmp.ne.s32.totalorder %s561_s24, %s362_s29  ;;  %p364_p12 = pneg %p567_p8 }
  0x14   : > { %p368_p1 = scmp.lt.u32.totalorder %s561_s24, %s686_s0  ;;  %p369_p2 = scmp.lt.u32.totalorder %s367_s4, %s362_s29 }
  0x15   : > { %p365_p13 = pnand %p364_p12, %p363_p11  ;;  %p371_p4 = scmp.lt.u32.totalorder %s362_s29, %s561_s24 }
  0x16   : > { %p370_p3 = por %p369_p2, %p368_p1 }
  0x17   : > { %p366_p0 = pneg %p365_p13 }
  0x18   : > { %p372_p5 = por %p371_p4, %p370_p3 }
  0x1a   : > { %p373_p6 = pnand %p372_p5, %p366_p0 }
  0x1c   : > { %376 = shalt.err (!%p373_p6)
}
  0x1d   : > { %s377_s7 = scalar_lea.vmem %s565_s26, 128  ;;  %s492_s8 = smov [#allocation2]  }
  0x1e   : > { %p378_p11 = scmp.ne.s32.totalorder %s565_s26, %s377_s7  ;;  %s382_s9 = sshll.u32 %s492_s8, 4  ;;  %s383_s9 = int_to_ptr.vmem [resolvable:$false] %s382_s9 }
  0x1f   : > { %s384_s15 = scalar_lea.vmem %s383_s9, 256  ;;  %p385_p10 = scmp.lt.s32.totalorder %s565_s26, %s383_s9 }
  0x20   : > { %p380_p13 = pnand %p378_p11, %p364_p12  ;;  %p386_p1 = scmp.lt.s32.totalorder %s384_s15, %s377_s7 }
  0x22   : > { %p381_p9 = pneg %p380_p13  ;;  %p387_p2 = por %p386_p1, %p385_p10 }
  0x24   : > { %p388_p3 = pnand %p387_p2, %p381_p9 }
  0x26   : > { %391 = shalt.err (!%p388_p3)
}
  0x27   : > { %321 = dma.hbm_to_vmem [thread:$0]  (!%p567_p8), %s561_s24, 128, %s565_s26, %s111_s28  }
  0x28   : > { %p692_p0 = scmp.lt.s32.totalorder %s490_s12, 3  ;;  %p693_p4 = scmp.ge.s32.totalorder %s490_s12, 1 }
  0x29   : > { %s612_s25 = scalar_lea.hbm %s687_s1, %s297_s21  ;;  %s132_s29 = scalar_lea.vmem [#allocation5], %s296_s20 }
  0x2a   : > { %p603_p5 = pnand %p693_p4, %p692_p0  ;;  %s139_s30 = sshll.u32 %s132_s29, 4  ;;  %s140_s30 = int_to_ptr.vmem [resolvable:$true] %s139_s30 }
  0x2b   : > { %s129_s24 = scalar_lea.sflag [#allocation6], %s552_s19  ;;  %s392_s26 = scalar_lea.hbm %s612_s25, 128 }
  0x2c   : > { %s694_s16 = scalar_select %p603_p5, 1, 0 }
  0x2d   : > { %p393_p9 = scmp.ne.s32.totalorder %s612_s25, %s392_s26  ;;  %s397_s21 = scalar_lea.hbm %s687_s1, 256 }
  0x2e   : > { %p398_p11 = scmp.lt.u32.totalorder %s612_s25, %s687_s1  ;;  %p399_p13 = scmp.lt.u32.totalorder %s397_s21, %s392_s26 }
  0x2f   : > { %p395_p10 = pnand %p393_p9, %p364_p12  ;;  %p401_p2 = scmp.lt.u32.totalorder %s392_s26, %s612_s25 }
  0x30   : > { %p400_p1 = por %p399_p13, %p398_p11 }
  0x31   : > { %p396_p6 = pneg %p395_p10 }
  0x32   : > { %p402_p3 = por %p401_p2, %p400_p1 }
  0x34   : > { %p403_p0 = pnand %p402_p3, %p396_p6 }
  0x36   : > { %406 = shalt.err (!%p403_p0)
}
  0x37   : > { %s407_s19 = scalar_lea.vmem %s140_s30, 128  ;;  %s493_s20 = smov [#allocation5]  }
  0x38   : > { %p408_p4 = scmp.ne.s32.totalorder %s140_s30, %s407_s19  ;;  %s412_s5 = sshll.u32 %s493_s20, 4  ;;  %s413_s5 = int_to_ptr.vmem [resolvable:$false] %s412_s5 }
  0x39   : > { %s414_s6 = scalar_lea.vmem %s413_s5, 256  ;;  %p415_p7 = scmp.lt.s32.totalorder %s140_s30, %s413_s5 }
  0x3a   : > { %p410_p9 = pnand %p408_p4, %p364_p12  ;;  %p416_p5 = scmp.lt.s32.totalorder %s414_s6, %s407_s19 }
  0x3c   : > { %p411_p10 = pneg %p410_p9  ;;  %p417_p11 = por %p416_p5, %p415_p7 }
  0x3e   : > { %p418_p13 = pnand %p417_p11, %p411_p10 }
  0x40   : > { %421 = shalt.err (!%p418_p13)
}
  0x41   : > { %324 = dma.hbm_to_vmem [thread:$0]  (!%p567_p8), %s612_s25, 128, %s140_s30, %s129_s24  }
  0x42   : > { %p695_p6 = scmp.ne.s32.totalorder %s694_s16, 0 }
  0x43   : > { %s150_s7 = sand.u32 (!%p695_p6), 1, %s482_s10   ;;  %p696_p12 = scmp.ne.s32.totalorder (!%p695_p6), %s690_s18, 0 }
  0x44   : > { %148 = sbr.rel (%p695_p6) target bundleno = 131 (0x83), region = 28  ;;  %s301_s8 = sshll.u32 (!%p695_p6), %s150_s7, 3 }
  0x45   : > { %s151_s9 = scalar_lea.sflag (!%p695_p6), [#allocation3], %s150_s7  ;;  %s154_s15 = scalar_lea.vmem (!%p695_p6), [#allocation2], %s301_s8 }
  0x4b   : > { %465 = dma.done.wait (%p696_p12), %s151_s9, 128  }
  0x4c   : > { %467 = vsyncadd (%p696_p12), %s151_s9, 4294967168  ;;  %s160_s22 = scalar_lea.sflag [#allocation6], %s150_s7  ;;  %s163_s23 = scalar_lea.vmem [#allocation5], %s301_s8 }
  0x4d   : > { %469 = dma.done.wait (%p696_p12), %s160_s22, 128  }
  0x4e   : > { %471 = vsyncadd (%p696_p12), %s160_s22, 4294967168  ;;  %p303_p7 = scmp.ne.s32.totalorder %s530_s13, 0 }
  0x4f   : > { %v494_v0 = vmov (!%p303_p7), 0.0  }
  0x50   : > { %187 = sbr.rel (%p303_p7) target bundleno = 87 (0x57), region = 40  ;;  %188 = vst [vmem:[#allocation7] sm:$0xff] (!%p303_p7), %v494_v0 }
  0x57 PF: > { %v189_v1 = vld [vmem:[%s154_s15] sm:$0xff]  ;;  %v190_v2 = vld [vmem:[%s163_s23] sm:$0xff]  ;;  %p304_p8 = scmp.ge.s32.totalorder %s530_s13, 1 }
  0x58   : > { %v191_v3 = vsub.f32 %v189_v1, %v190_v2  ;;  %v197_v5 = vld [vmem:[#allocation7] sm:$0xff] (!%p304_p8) }
  0x59   : > { %196 = sbr.rel (%p304_p8) target bundleno = 96 (0x60), region = 44 }
  0x5a   : > { %v192_v4 = vand.u32 2147483647, %v191_v3 }
  0x5c   : > { %v199_v6 = vadd.f32 (!%p304_p8), %v197_v5, %v192_v4 }
  0x5e   : > { %200 = vst [vmem:[#allocation7] sm:$0xff] (!%p304_p8), %v199_v6 }
  0x60 PF: > { %p305_p5 = scmp.ne.s32.totalorder %s530_s13, 1 }
  0x61   : > { %v205_v7 = vlaneseq (!%p305_p5) }
  0x62   : > { %204 = sbr.rel (%p305_p5) target bundleno = 106 (0x6a), region = 48 }
  0x63   : > { %v206_v8 = vshrl.u32 (!%p305_p5), %v205_v7, 7 }
  0x65   : > { %v209_v9 = vld [vmem:[#allocation7] sm:$0xff] (!%p305_p5)  ;;  %vm207_vm0 = vcmp.lt.s32.totalorder (!%p305_p5), %v206_v8, 4 }
  0x66   : > { %v208_v10 = vsel (!%p305_p5), %vm207_vm0, %v192_v4, 0.0 }
  0x67   : > { %v211_v11 = vadd.f32 (!%p305_p5), %v209_v9, %v208_v10 }
  0x69   : > { %212 = vst [vmem:[#allocation7] sm:$0xff] %v211_v11 }
  0x6a PF: > { %p326_p1 = scmp.eq.s32.totalorder %s530_s13, 1  ;;  %s495_s18 = smov [#allocation7]  }
  0x6b   : > { %s220_s27 = sshll.u32 %s495_s18, 4  ;;  %s221_s27 = int_to_ptr.vmem [resolvable:$true] %s220_s27 }
  0x6c   : > { %s422_s16 = scalar_lea.vmem %s221_s27, 128  ;;  %p429_p4 = scmp.lt.s32.totalorder %s221_s27, %s221_s27 }
  0x6d   : > { %p423_p2 = scmp.ne.s32.totalorder %s221_s27, %s422_s16  ;;  %p430_p9 = scmp.lt.s32.totalorder %s422_s16, %s422_s16 }
  0x6f   : > { %p424_p3 = pnand %p423_p2, %p326_p1  ;;  %p431_p10 = por %p430_p9, %p429_p4 }
  0x71   : > { %p425_p0 = pneg %p424_p3 }
  0x73   : > { %p432_p11 = pnand %p431_p10, %p425_p0 }
  0x75   : > { %435 = shalt.err (!%p432_p11)
}
  0x76   : > { %s436_s30 = scalar_lea.hbm %s688_s2, 128 }
  0x77   : > { %p437_p13 = scmp.ne.s32.totalorder %s688_s2, %s436_s30  ;;  %p442_p7 = scmp.lt.u32.totalorder %s436_s30, %s688_s2 }
  0x79   : > { %p438_p6 = pnand %p437_p13, %p326_p1 }
  0x7b   : > { %p439_p12 = pneg %p438_p6 }
  0x7d   : > { %p444_p8 = pnand %p442_p7, %p439_p12 }
  0x7f   : > { %447 = shalt.err (!%p444_p8)
}
  0x80   : > { %315 = dma.vmem_to_hbm [thread:$0]  (%p326_p1), %s221_s27, 128, %s688_s2, [#allocation4]  }
  0x81   : > { %473 = dma.done.wait (%p326_p1), [#allocation4], 128  }
  0x82   : > { %475 = vsyncadd (%p326_p1), [#allocation4], 4294967168 }
  0x83 PF: > { %p16_p5 = scmp.ge.s32.totalorder %s533_s14, 4   ;;  %s697_s9 = smov %s482_s10 }
  0x84   : > { %s698_s10 = smov %s486_s11  ;;  %s699_s11 = smov %s543_s17 }
  0x85   : > { %s700_s12 = smov %s533_s14  ;;  %18 = sbr.rel (!%p16_p5) target bundleno = 6 (0x6), region = 90 }
  0x8c   :  { %233 = vsyncpa [#allocation3], 1 }
  0x8d   :  { %235 = vsyncpa [#allocation3 + $0x1], 1 }
  0x8e   :  { %236 = vsyncpa [#allocation6], 1 }
  0x8f   :  { %238 = vsyncpa [#allocation6 + $0x1], 1 }
  0x90   :  { %239 = vsyncpa [#allocation4], 1 }
  0x91   :  { %241 = vsyncpa [#allocation4 + $0x1], 1 }

</bundles_post_ra>
